<compile_context>
chip_gen: v5e
topology: v5e:2x2
jax: 0.10.0
libtpu: 0.0.40
codegen_flags: <defaults>
</compile_context>

<pallas_src>
import functools

import jax
import jax.numpy as jnp
from jax import lax
from jax.experimental import pallas as pl
from jax.experimental.pallas import tpu as pltpu


def _round_up(x, m):
    return (x + m - 1) // m * m


def _vmem_capacity_bytes():
    """Best-effort query of per-core VMEM capacity; conservative fallback."""
    try:
        info = pltpu.get_tpu_info()
        cap = int(getattr(info, "vmem_capacity_bytes", 0) or 0)
        if cap >= (16 << 20):
            return min(cap, 128 << 20)
    except Exception:
        pass
    return 64 << 20  # conservative (v7x per-TC); v5e/v6e have 128 MiB


def _default_col_splits():
    """2-way megacore split only pays off on v7x (2 TCs/chip); elsewhere it
    just serializes and adds a partial-G combine, so default to 1."""
    try:
        kind = jax.devices()[0].device_kind.lower()
    except Exception:
        return 1
    return 2 if "v7" in kind else 1


def _gram_tile_kernel(x_ref, g_ref, *, tiles_per_core, tile_cols, total_cols,
                      masked):
    """Accumulate x_tile @ x_tile.T over the column-tile (reduction) grid axis.

    x_ref: (N, tm) feature column tile (auto-pipelined, double-buffered)
    g_ref: (N, N)  unscaled Gram output for this core split (resident f32 block)
    """
    k = pl.program_id(1)

    @pl.when(k == 0)
    def _():
        g_ref[...] = jnp.zeros_like(g_ref)

    x = x_ref[...]
    if masked:
        # Ragged tail tile: columns >= total_cols hold unspecified data from the
        # partial DMA — zero them so they cannot corrupt the Gram sum.
        tile_idx = pl.program_id(0) * tiles_per_core + k
        col0 = tile_idx * tile_cols
        lane = lax.broadcasted_iota(jnp.int32, x.shape, 1)
        x = jnp.where(lane < (total_cols - col0), x, jnp.zeros_like(x))

    # Contract the last dim of both operands -> (N, N); no explicit x.T.
    g_ref[...] += lax.dot_general(
        x, x, (((1,), (1,)), ((), ())), preferred_element_type=jnp.float32
    )


def style_loss_forward(x, target, weight, *, col_splits=None, max_tile_bytes=None):
    """x: (a, b, c, d) NCHW activations; target: (a*b, a*b) weighted gram target.

    Returns (output, G, loss) == (input, weight * gram(input), MSE(G, target)).
    Feed bf16 activations to halve HBM traffic (accumulation stays f32).
    """
    a, b, c, d = x.shape
    N, M = a * b, c * d

    feats = x.reshape(N, M)                      # features = input.view(a*b, c*d)
    itemsize = feats.dtype.itemsize

    # ---- tile-size / VMEM budgeting (generation-aware) -------------------
    vmem_cap = _vmem_capacity_bytes()
    usable = vmem_cap * 2 // 3                   # headroom for compiler scratch
    out_bytes = 2 * N * N * 4                    # (double-buffered) resident G block
    feat_budget = max(2 << 20, usable - out_bytes)

    per_buf = min(feat_budget // 2, 48 << 20)    # bytes per feature buffer
    if max_tile_bytes is not None:
        per_buf = min(per_buf, int(max_tile_bytes))

    tm = max(1, per_buf // (N * itemsize))       # size tiles by bytes, not columns
    tm = max(128, (tm // 128) * 128)             # lane-aligned
    tm = min(tm, _round_up(M, 128))              # never wider than the (padded) row

    n_tiles = pl.cdiv(M, tm)
    masked = (M % tm) != 0                       # in-kernel mask replaces jnp.pad

    if col_splits is None:
        col_splits = _default_col_splits()
    ncores = col_splits if (col_splits > 1 and n_tiles % col_splits == 0
                            and n_tiles >= 2 * col_splits) else 1
    tiles_per_core = n_tiles // ncores

    vmem_need = 2 * N * tm * itemsize + out_bytes
    vmem_limit = int(min(vmem_cap, max(32 << 20, vmem_need + (8 << 20))))

    # TODO(synk): for very large channel counts (N >~ 1500) the resident (N,N)
    # f32 block exceeds v7x VMEM; an output-tiled, symmetry-exploiting path
    # (upper-triangular block pairs) would be needed there.

    kernel = functools.partial(
        _gram_tile_kernel,
        tiles_per_core=tiles_per_core, tile_cols=tm, total_cols=M, masked=masked,
    )

    cost = pl.CostEstimate(
        flops=2 * N * N * M,
        transcendentals=0,
        bytes_accessed=N * M * itemsize + ncores * N * N * 4,
    )

    partial_g = pl.pallas_call(
        kernel,
        out_shape=jax.ShapeDtypeStruct((ncores, N, N), jnp.float32),
        grid_spec=pltpu.PrefetchScalarGridSpec(
            num_scalar_prefetch=0,
            grid=(ncores, tiles_per_core),
            in_specs=[
                pl.BlockSpec((N, tm), lambda cc, k: (0, cc * tiles_per_core + k)),
            ],
            out_specs=pl.BlockSpec((None, N, N), lambda cc, k: (cc, 0, 0)),
        ),
        compiler_params=pltpu.CompilerParams(
            dimension_semantics=("parallel", "arbitrary"),
            vmem_limit_bytes=vmem_limit,
        ),
        cost_estimate=cost,
    )(feats)

    # Tiny epilogue in plain JAX: combine per-core partials (N x N only),
    # apply G.div(a*b*c*d) and G.mul_(weight), then the MSE loss.
    raw = partial_g.sum(axis=0) if ncores > 1 else partial_g[0]
    scale = jnp.asarray(weight, jnp.float32) / jnp.float32(a * b * c * d)
    G = raw * scale
    loss = jnp.mean((G - target.astype(jnp.float32)) ** 2)

    # self.output = input.clone() -> returning x unchanged is the functional clone.
    # TODO(synk): backward()/loss.backward() autograd path not implemented
    # (forward-only kernel; use jax.grad on this wrapper if needed).
    return x, G, loss


def _gram_ref(x):
    a, b, c, d = x.shape
    f = x.reshape(a * b, c * d)
    return (f @ f.T) / (a * b * c * d)


if __name__ == "__main__":
    key = jax.random.PRNGKey(0)
    k_in, k_style, k_in2, k_style2 = jax.random.split(key, 4)

    # ---- case 1: (2,4,16,16) — single full tile path ---------------------
    a, b, c, d = 2, 4, 16, 16
    weight = 1000.0
    x = jax.random.normal(k_in, (a, b, c, d), dtype=jnp.float32)
    style_feature = jax.random.normal(k_style, (a, b, c, d), dtype=jnp.float32)
    # StyleLoss.__init__: target = gram(style_feature).detach() * weight
    target = (_gram_ref(style_feature) * weight).astype(jnp.float32)

    out, G, loss = style_loss_forward(x, target, weight)
    jax.block_until_ready((out, G, loss))

    G_ref = _gram_ref(x) * weight
    loss_ref = jnp.mean((G_ref - target) ** 2)
    assert jnp.allclose(out, x), "output must equal the input (clone)"
    assert jnp.allclose(G, G_ref, rtol=1e-5, atol=1e-4), "gram mismatch"
    assert jnp.allclose(loss, loss_ref, rtol=1e-5, atol=1e-3), "loss mismatch"

    # ---- case 2: M=320 with forced 128-col tiles — exercises the in-kernel
    # ragged-tail mask (replaces the old jnp.pad HBM round-trip) -------------
    a2, b2, c2, d2 = 1, 8, 16, 20
    w2 = 500.0
    x2 = jax.random.normal(k_in2, (a2, b2, c2, d2), dtype=jnp.float32)
    style2 = jax.random.normal(k_style2, (a2, b2, c2, d2), dtype=jnp.float32)
    target2 = (_gram_ref(style2) * w2).astype(jnp.float32)

    out2, G2, loss2 = style_loss_forward(
        x2, target2, w2, max_tile_bytes=128 * (a2 * b2) * 4)  # -> tm = 128
    jax.block_until_ready((out2, G2, loss2))

    G2_ref = _gram_ref(x2) * w2
    loss2_ref = jnp.mean((G2_ref - target2) ** 2)
    assert jnp.allclose(out2, x2), "output must equal the input (clone, case 2)"
    assert jnp.allclose(G2, G2_ref, rtol=1e-5, atol=1e-4), "gram mismatch (ragged)"
    assert jnp.allclose(loss2, loss2_ref, rtol=1e-5, atol=1e-3), "loss mismatch (ragged)"

    print("KERNEL_OK")
</pallas_src>

<mosaic_0001>
module attributes {stable_mosaic.version = 11 : i64} {
  func.func @_gram_tile_kernel(%arg0: i32, %arg1: i32, %arg2: memref<8x256xf32, #tpu.memory_space<vmem>>, %arg3: memref<1x8x8xf32, #tpu.memory_space<vmem>>) attributes {dimension_semantics = [#tpu.dimension_semantics<parallel>, #tpu.dimension_semantics<arbitrary>], iteration_bounds = array<i64: 1, 1>, scalar_prefetch = 0 : i64, scratch_operands = 0 : i64, tpu.core_type = #tpu.core_type<tc>, window_params = [{transform_indices = @transform_0, window_bounds = array<i64: 8, 256>}, {transform_indices = @transform_1, window_bounds = array<i64: 1, 8, 8>}]} {
    %c0_i32 = arith.constant 0 : i32
    %0 = arith.cmpi eq, %arg1, %c0_i32 : i32
    %1 = arith.extui %0 : i1 to i32
    %c0_i32_0 = arith.constant 0 : i32
    %2 = arith.cmpi ne, %1, %c0_i32_0 : i32
    scf.if %2 {
      %cst_8 = arith.constant 0.000000e+00 : f32
      %11 = vector.broadcast %cst_8 : f32 to vector<8x8xf32>
      %c0_9 = arith.constant 0 : index
      %c0_10 = arith.constant 0 : index
      %c0_11 = arith.constant 0 : index
      %12 = vector.load %arg3[%c0_9, %c0_10, %c0_11] : memref<1x8x8xf32, #tpu.memory_space<vmem>>, vector<1x8x8xf32>
      %13 = vector.shape_cast %12 : vector<1x8x8xf32> to vector<8x8xf32>
      %14 = vector.shape_cast %11 : vector<8x8xf32> to vector<1x8x8xf32>
      tpu.vector_store %arg3[%c0_9, %c0_10, %c0_11], %14 {strides = array<i32>} : memref<1x8x8xf32, #tpu.memory_space<vmem>>, vector<1x8x8xf32>,
    } else {
    }
    %c0 = arith.constant 0 : index
    %c0_1 = arith.constant 0 : index
    %3 = vector.load %arg2[%c0, %c0_1] : memref<8x256xf32, #tpu.memory_space<vmem>>, vector<8x256xf32>
    %c0_2 = arith.constant 0 : index
    %c0_3 = arith.constant 0 : index
    %c0_4 = arith.constant 0 : index
    %4 = vector.load %arg3[%c0_2, %c0_3, %c0_4] : memref<1x8x8xf32, #tpu.memory_space<vmem>>, vector<1x8x8xf32>
    %5 = vector.shape_cast %4 : vector<1x8x8xf32> to vector<8x8xf32>
    %cst = arith.constant dense<0.000000e+00> : vector<8x8xf32>
    %6 = tpu.matmul %3, %3, %cst {dimension_numbers = #tpu.dot_dimension_numbers<[1], [1], [0], [0], [0, 0, 1, 0], [], []>} : vector<8x256xf32>, vector<8x256xf32>, vector<8x8xf32> -> vector<8x8xf32>
    %7 = arith.addf %5, %6 : vector<8x8xf32>
    %c0_5 = arith.constant 0 : index
    %c0_6 = arith.constant 0 : index
    %c0_7 = arith.constant 0 : index
    %8 = vector.load %arg3[%c0_5, %c0_6, %c0_7] : memref<1x8x8xf32, #tpu.memory_space<vmem>>, vector<1x8x8xf32>
    %9 = vector.shape_cast %8 : vector<1x8x8xf32> to vector<8x8xf32>
    %10 = vector.shape_cast %7 : vector<8x8xf32> to vector<1x8x8xf32>
    tpu.vector_store %arg3[%c0_5, %c0_6, %c0_7], %10 {strides = array<i32>} : memref<1x8x8xf32, #tpu.memory_space<vmem>>, vector<1x8x8xf32>,
    return
  }
  func.func @transform_0(%arg0: i32, %arg1: i32) -> (i32, i32) {
    %c1_i32 = arith.constant 1 : i32
    %0 = arith.muli %arg0, %c1_i32 : i32
    %1 = arith.addi %0, %arg1 : i32
    %c0_i32 = arith.constant 0 : i32
    %c0_i32_0 = arith.constant 0 : i32
    return %c0_i32, %1 : i32, i32
  }
  func.func @transform_1(%arg0: i32, %arg1: i32) -> (i32, i32, i32) {
    %c0_i32 = arith.constant 0 : i32
    %c0_i32_0 = arith.constant 0 : i32
    %c0_i32_1 = arith.constant 0 : i32
    return %arg0, %c0_i32, %c0_i32_0 : i32, i32, i32
  }
}

</mosaic_0001>

<bundles_post_ra>
// kernel: tpu_custom_call.1
= control target key start
LH: loop header
LB: loop body
LE: loop exit
PB: predicated region body
PF: predicated region fallthrough
CT: control target
= control target key end

     0   :  { %6 = vsyncpa [#allocation3], 0  ;;  %s174_s0 = inlined_call_operand.hbm [shape: f32[8,256], index: 0, kind: input, shape index: {}]   ;;  %s175_s1 = inlined_call_operand.hbm [shape: f32[1,8,8], index: 1, kind: output, shape index: {}]  }
   0x1   :  { %7 = vsyncpa [#allocation4], 0  ;;  %s17_s8 = sshll.u32 %s174_s0, 4  ;;  %s153_s9 = smov [#allocation2]   ;;  %s18_s8 = int_to_ptr.hbm [resolvable:$true] %s17_s8 }
   0x2   :  { %s19_s10 = sshll.u32 %s153_s9, 4  ;;  %s20_s10 = int_to_ptr.vmem [resolvable:$true] %s19_s10 }
   0x3   :  { %22 = dma.hbm_to_vmem [thread:$0]  %s18_s8, 256, %s20_s10, [#allocation3]  }
   0x4   :  { %149 = dma.done.wait [#allocation3], 256  }
   0x5   :  { %150 = vsyncadd [#allocation3], 4294967040  ;;  %vm33_vm0 = vcmask 64512   ;;  %v154_v0 = vmov 0.0   ;;  %v35_v1 = vld [vmem:[#allocation2] sm:$0xff]  ;;  %v36_v2 = vld [vmem:[#allocation2 + $0x8] sm:$0xff] }
   0x6   :  { %34 = vst.msk [vmem:[#allocation5] sm:$0xff] %vm33_vm0, %v154_v0  ;;  %53 = vmatpush.xpose.msra.mxu0 %v35_v1  ;;  %73 = vmatpush.xpose.msra.mxu1 %v36_v2  ;;  %s155_s0 = smov [#allocation5]   ;;  %s88_s14 = sshll.u32 %s175_s1, 4  ;;  %s89_s14 = int_to_ptr.hbm [resolvable:$true] %s88_s14 }
   0x7   :  { %s86_s11 = sshll.u32 %s155_s0, 4  ;;  %s87_s11 = int_to_ptr.vmem [resolvable:$true] %s86_s11 }
   0x9   :  { %54 = vmatmul.f32.vlgmr.msra.gmra.mxu0 %v35_v1  ;;  %74 = vmatmul.f32.vlgmr.msra.gmra.mxu1 %v36_v2 }
   0xd   :  { %v37_v4 = vld [vmem:[#allocation5] sm:$0xff] }
  0x86   :  { %v55_v3 = vpop.f32.mrf.mxu0  ;;  %v75_v5 = vpop.f32.mrf.mxu1 }
  0x87   :  { %v76_v6 = vadd.f32 %v75_v5, %v55_v3 }
  0x89   :  { %v78_v7 = vadd.f32 %v76_v6, %v37_v4 }
  0x8b   :  { %80 = vst.msk [vmem:[#allocation5] sm:$0xff] %vm33_vm0, %v78_v7 }
  0x8c   :  { %91 = dma.vmem_to_hbm [thread:$0]  %s87_s11, 128, %s89_s14, [#allocation4]  }
  0x8d   :  { %151 = dma.done.wait [#allocation4], 128  }
  0x8e   :  { %152 = vsyncadd [#allocation4], 4294967168 }
  0x8f   :  { %96 = vsyncpa [#allocation3], 1 }
  0x90   :  { %97 = vsyncpa [#allocation4], 1 }

</bundles_post_ra>
